<compile_context>
chip_gen: v7x
topology: tpu7x:2x2x1
jax: 0.10.0
libtpu: 0.0.40
codegen_flags: <defaults>
</compile_context>

<pallas_src>
import jax
import jax.numpy as jnp
from jax.experimental import pallas as pl
from jax.experimental.pallas import tpu as pltpu


def _fused_mlp_kernel(x_ref, w1_ref, b1_ref, w2_ref, b2_ref, w3_ref, b3_ref,
                      o_ref):
    # Cast x to bf16 in-kernel (VPU has slack; avoids a separate HBM cast pass).
    xb = x_ref[...].astype(jnp.bfloat16)                      # [Tb, D]

    # Layer 1 (BN folded into W1/b1): h1[64, Tb] = W1^T @ x^T, ReLU.
    h = jax.lax.dot_general(w1_ref[...], xb,
                            (((1,), (1,)), ((), ())),
                            preferred_element_type=jnp.float32)
    h = jnp.maximum(h + b1_ref[...], 0.0)
    # TODO(synk): Dropout(0.3) is identity in eval mode.

    # Layer 2 (BN folded into W2/b2): h2[32, Tb] = W2^T @ h1, ReLU.
    h = jnp.dot(w2_ref[...], h.astype(jnp.bfloat16),
                preferred_element_type=jnp.float32)
    h = jnp.maximum(h + b2_ref[...], 0.0)
    # TODO(synk): Dropout(0.2) is identity in eval mode.

    # Layer 3: logits[C, Tb] = W3^T @ h2 + b3.
    o_ref[...] = (jnp.dot(w3_ref[...], h.astype(jnp.bfloat16),
                          preferred_element_type=jnp.float32)
                  + b3_ref[...])


def _fold_bn_into_linear(params):
    """Fold eval-mode BatchNorm affine into the preceding Linear (identical math)."""
    w1 = params["w1"] * params["bn1_scale"]
    b1 = params["b1"] * params["bn1_scale"] + params["bn1_shift"]
    w2 = params["w2"] * params["bn2_scale"]
    b2 = params["b2"] * params["bn2_scale"] + params["bn2_shift"]
    return w1, b1, w2, b2, params["w3"], params["b3"]


def _choose_tile(B, tile_b):
    """128-aligned batch tile; >=2 grid steps when B allows; v7x-safe cap."""
    LANE = 128
    if B <= LANE:
        return B                      # single block; block dims == full array dims
    half = -(-B // 2)                 # ceil(B / 2) -> at least 2 grid steps
    tile = min(tile_b, ((half + LANE - 1) // LANE) * LANE)
    tile = max(LANE, (tile // LANE) * LANE)
    # Cap so the lane-padded per-step VMEM footprint stays well under v7x's 64 MiB.
    return min(tile, 16384)


def tabular_nn_forward(x, params, tile_b=8192):
    """x: [B, D] float32. params: dict of weights (see init_params). Returns [B, C]."""
    B, D = x.shape
    C = params["w3"].shape[1]

    w1, b1, w2, b2, w3, b3 = _fold_bn_into_linear(params)

    # Transposed ("batch on lanes") weights in bf16 for the MXU; biases as f32
    # column vectors.  These are tiny one-time wrapper ops on the parameters.
    w1t = w1.T.astype(jnp.bfloat16)   # [64, D]
    w2t = w2.T.astype(jnp.bfloat16)   # [32, 64]
    w3t = w3.T.astype(jnp.bfloat16)   # [C, 32]
    b1c, b2c, b3c = b1.T, b2.T, b3.T  # [64,1], [32,1], [C,1] f32

    tile = _choose_tile(B, tile_b)
    grid = (pl.cdiv(B, tile),)        # partial last block handled by Pallas masking

    # Per-step VMEM estimate (lane/sublane padded, double-buffered x/out tiles,
    # f32 intermediates, bf16 x copy) -> explicit scoped-VMEM limit with headroom,
    # capped at v7x's 64 MiB physical VMEM.
    per_row = 2 * 128 * 4 + 2 * 8 * 4 + (64 + 32) * 4 + 128 * 2
    footprint = tile * per_row + (1 << 20)
    vmem_limit = int(min(64 << 20, max(32 << 20, 2 * footprint)))

    flops = 2 * B * (D * 64 + 64 * 32 + 32 * C)
    bytes_accessed = (x.size * x.dtype.itemsize + B * C * 4 +
                      sum(int(a.size) * a.dtype.itemsize
                          for a in (w1t, b1c, w2t, b2c, w3t, b3c)))
    cost = pl.CostEstimate(flops=flops, transcendentals=0,
                           bytes_accessed=bytes_accessed)

    const = lambda i: (0, 0)
    in_specs = [
        pl.BlockSpec((tile, D), lambda i: (i, 0)),   # x: tiled over batch (rows)
        pl.BlockSpec(w1t.shape, const),              # weights/biases VMEM-resident
        pl.BlockSpec(b1c.shape, const),
        pl.BlockSpec(w2t.shape, const),
        pl.BlockSpec(b2c.shape, const),
        pl.BlockSpec(w3t.shape, const),
        pl.BlockSpec(b3c.shape, const),
    ]
    out_specs = pl.BlockSpec((C, tile), lambda i: (0, i))   # batch on lanes

    out_t = pl.pallas_call(
        _fused_mlp_kernel,
        grid=grid,
        in_specs=in_specs,
        out_specs=out_specs,
        out_shape=jax.ShapeDtypeStruct((C, B), jnp.float32),
        compiler_params=pltpu.CompilerParams(
            dimension_semantics=("parallel",),
            vmem_limit_bytes=vmem_limit),
        cost_estimate=cost,
    )(x, w1t, b1c, w2t, b2c, w3t, b3c)

    return out_t.T   # [B, C], matches PyTorch layout


def init_params(key, input_dim, num_classes=2):
    """Deterministic synthetic init matching the PyTorch module's shapes."""
    ks = jax.random.split(key, 6)
    eps = 1e-5

    def lin(kw, kb, fan_in, fan_out):
        bound = 1.0 / jnp.sqrt(fan_in)
        w = jax.random.uniform(kw, (fan_in, fan_out), jnp.float32, -bound, bound)
        b = jax.random.uniform(kb, (1, fan_out), jnp.float32, -bound, bound)
        return w, b

    w1, b1 = lin(ks[0], ks[1], input_dim, 64)
    w2, b2 = lin(ks[2], ks[3], 64, 32)
    w3, b3 = lin(ks[4], ks[5], 32, num_classes)

    # BatchNorm1d fresh init: gamma=1, beta=0, running_mean=0, running_var=1.
    # Eval-mode BN: y = x*scale + shift, scale = gamma/sqrt(rv+eps), shift = beta - rm*scale
    def bn_fold(dim):
        gamma = jnp.ones((1, dim), jnp.float32)
        beta = jnp.zeros((1, dim), jnp.float32)
        rm = jnp.zeros((1, dim), jnp.float32)
        rv = jnp.ones((1, dim), jnp.float32)
        scale = gamma / jnp.sqrt(rv + eps)
        shift = beta - rm * scale
        return scale, shift

    bn1_scale, bn1_shift = bn_fold(64)
    bn2_scale, bn2_shift = bn_fold(32)

    return dict(w1=w1, b1=b1, bn1_scale=bn1_scale, bn1_shift=bn1_shift,
                w2=w2, b2=b2, bn2_scale=bn2_scale, bn2_shift=bn2_shift,
                w3=w3, b3=b3)


def _reference_forward_f32(x, p):
    """Full-precision eval-mode reference (PyTorch semantics)."""
    h = x @ p["w1"] + p["b1"]
    h = h * p["bn1_scale"] + p["bn1_shift"]
    h = jnp.maximum(h, 0.0)
    h = h @ p["w2"] + p["b2"]
    h = h * p["bn2_scale"] + p["bn2_shift"]
    h = jnp.maximum(h, 0.0)
    return h @ p["w3"] + p["b3"]


def _reference_forward_bf16(x, p):
    """Reference with the same bf16 matmul operands / f32 accumulation as the kernel."""
    w1, b1, w2, b2, w3, b3 = _fold_bn_into_linear(p)
    w1 = w1.astype(jnp.bfloat16)
    w2 = w2.astype(jnp.bfloat16)
    w3 = w3.astype(jnp.bfloat16)
    h = jnp.dot(x.astype(jnp.bfloat16), w1, preferred_element_type=jnp.float32) + b1
    h = jnp.maximum(h, 0.0)
    h = jnp.dot(h.astype(jnp.bfloat16), w2, preferred_element_type=jnp.float32) + b2
    h = jnp.maximum(h, 0.0)
    return jnp.dot(h.astype(jnp.bfloat16), w3, preferred_element_type=jnp.float32) + b3


if __name__ == "__main__":
    key = jax.random.PRNGKey(0)
    k_x, k_p = jax.random.split(key)

    batch, input_dim, num_classes = 8, 16, 2
    x = jax.random.normal(k_x, (batch, input_dim), jnp.float32)
    params = init_params(k_p, input_dim, num_classes)

    out = tabular_nn_forward(x, params)
    out = jax.block_until_ready(out)

    assert out.shape == (batch, num_classes)
    # Tight check vs. a reference using the same bf16 matmul operands.
    ref_bf16 = _reference_forward_bf16(x, params)
    assert jnp.allclose(out, ref_bf16, atol=1e-3, rtol=1e-3)
    # Loose check vs. the full-f32 PyTorch-semantics reference (bf16 x is a
    # deliberate accuracy trade-off for raw tabular features).
    ref_f32 = _reference_forward_f32(x, params)
    assert jnp.allclose(out, ref_f32, atol=5e-2, rtol=5e-2)

    print("KERNEL_OK")
</pallas_src>

<mosaic_0001>
module attributes {stable_mosaic.version = 11 : i64} {
  func.func @_fused_mlp_kernel(%arg0: i32, %arg1: memref<8x16xf32, #tpu.memory_space<vmem>>, %arg2: memref<64x16xbf16, #tpu.memory_space<vmem>>, %arg3: memref<64x1xf32, #tpu.memory_space<vmem>>, %arg4: memref<32x64xbf16, #tpu.memory_space<vmem>>, %arg5: memref<32x1xf32, #tpu.memory_space<vmem>>, %arg6: memref<2x32xbf16, #tpu.memory_space<vmem>>, %arg7: memref<2x1xf32, #tpu.memory_space<vmem>>, %arg8: memref<2x8xf32, #tpu.memory_space<vmem>>) attributes {dimension_semantics = [#tpu.dimension_semantics<parallel>], iteration_bounds = array<i64: 1>, scalar_prefetch = 0 : i64, scratch_operands = 0 : i64, tpu.core_type = #tpu.core_type<tc>, window_params = [{transform_indices = @transform_0, window_bounds = array<i64: 8, 16>}, {pipeline_mode = #tpu.pipeline_mode<synchronous>, transform_indices = @transform_1, window_bounds = array<i64: 64, 16>}, {pipeline_mode = #tpu.pipeline_mode<synchronous>, transform_indices = @transform_2, window_bounds = array<i64: 64, 1>}, {pipeline_mode = #tpu.pipeline_mode<synchronous>, transform_indices = @transform_3, window_bounds = array<i64: 32, 64>}, {pipeline_mode = #tpu.pipeline_mode<synchronous>, transform_indices = @transform_4, window_bounds = array<i64: 32, 1>}, {pipeline_mode = #tpu.pipeline_mode<synchronous>, transform_indices = @transform_5, window_bounds = array<i64: 2, 32>}, {pipeline_mode = #tpu.pipeline_mode<synchronous>, transform_indices = @transform_6, window_bounds = array<i64: 2, 1>}, {transform_indices = @transform_7, window_bounds = array<i64: 2, 8>}]} {
    %c0 = arith.constant 0 : index
    %c0_0 = arith.constant 0 : index
    %0 = vector.load %arg1[%c0, %c0_0] : memref<8x16xf32, #tpu.memory_space<vmem>>, vector<8x16xf32>
    %1 = arith.truncf %0 : vector<8x16xf32> to vector<8x16xbf16>
    %c0_1 = arith.constant 0 : index
    %c0_2 = arith.constant 0 : index
    %2 = vector.load %arg2[%c0_1, %c0_2] : memref<64x16xbf16, #tpu.memory_space<vmem>>, vector<64x16xbf16>
    %cst = arith.constant dense<0.000000e+00> : vector<64x8xf32>
    %3 = tpu.matmul %2, %1, %cst {dimension_numbers = #tpu.dot_dimension_numbers<[1], [1], [0], [0], [0, 0, 1, 0], [], []>} : vector<64x16xbf16>, vector<8x16xbf16>, vector<64x8xf32> -> vector<64x8xf32>
    %c0_3 = arith.constant 0 : index
    %c0_4 = arith.constant 0 : index
    %4 = vector.load %arg3[%c0_3, %c0_4] : memref<64x1xf32, #tpu.memory_space<vmem>>, vector<64x1xf32>
    %5 = vector.broadcast %4 : vector<64x1xf32> to vector<64x8xf32>
    %6 = arith.addf %3, %5 : vector<64x8xf32>
    %cst_5 = arith.constant 0.000000e+00 : f32
    %7 = vector.broadcast %cst_5 : f32 to vector<64x8xf32>
    %8 = arith.maximumf %6, %7 : vector<64x8xf32>
    %c0_6 = arith.constant 0 : index
    %c0_7 = arith.constant 0 : index
    %9 = vector.load %arg4[%c0_6, %c0_7] : memref<32x64xbf16, #tpu.memory_space<vmem>>, vector<32x64xbf16>
    %10 = arith.truncf %8 : vector<64x8xf32> to vector<64x8xbf16>
    %cst_8 = arith.constant dense<0.000000e+00> : vector<32x8xf32>
    %11 = tpu.matmul %9, %10, %cst_8 {dimension_numbers = #tpu.dot_dimension_numbers<[1], [0], [0], [1], [0, 0, 1, 1], [], []>} : vector<32x64xbf16>, vector<64x8xbf16>, vector<32x8xf32> -> vector<32x8xf32>
    %c0_9 = arith.constant 0 : index
    %c0_10 = arith.constant 0 : index
    %12 = vector.load %arg5[%c0_9, %c0_10] : memref<32x1xf32, #tpu.memory_space<vmem>>, vector<32x1xf32>
    %13 = vector.broadcast %12 : vector<32x1xf32> to vector<32x8xf32>
    %14 = arith.addf %11, %13 : vector<32x8xf32>
    %cst_11 = arith.constant 0.000000e+00 : f32
    %15 = vector.broadcast %cst_11 : f32 to vector<32x8xf32>
    %16 = arith.maximumf %14, %15 : vector<32x8xf32>
    %c0_12 = arith.constant 0 : index
    %c0_13 = arith.constant 0 : index
    %17 = vector.load %arg6[%c0_12, %c0_13] : memref<2x32xbf16, #tpu.memory_space<vmem>>, vector<2x32xbf16>
    %18 = arith.truncf %16 : vector<32x8xf32> to vector<32x8xbf16>
    %cst_14 = arith.constant dense<0.000000e+00> : vector<2x8xf32>
    %19 = tpu.matmul %17, %18, %cst_14 {dimension_numbers = #tpu.dot_dimension_numbers<[1], [0], [0], [1], [0, 0, 1, 1], [], []>} : vector<2x32xbf16>, vector<32x8xbf16>, vector<2x8xf32> -> vector<2x8xf32>
    %c0_15 = arith.constant 0 : index
    %c0_16 = arith.constant 0 : index
    %20 = vector.load %arg7[%c0_15, %c0_16] : memref<2x1xf32, #tpu.memory_space<vmem>>, vector<2x1xf32>
    %21 = vector.broadcast %20 : vector<2x1xf32> to vector<2x8xf32>
    %22 = arith.addf %19, %21 : vector<2x8xf32>
    %c0_17 = arith.constant 0 : index
    %c0_18 = arith.constant 0 : index
    %23 = vector.load %arg8[%c0_17, %c0_18] : memref<2x8xf32, #tpu.memory_space<vmem>>, vector<2x8xf32>
    tpu.vector_store %arg8[%c0_17, %c0_18], %22 {strides = array<i32>} : memref<2x8xf32, #tpu.memory_space<vmem>>, vector<2x8xf32>,
    return
  }
  func.func @transform_0(%arg0: i32) -> (i32, i32) {
    %c0_i32 = arith.constant 0 : i32
    %c0_i32_0 = arith.constant 0 : i32
    return %arg0, %c0_i32 : i32, i32
  }
  func.func @transform_1(%arg0: i32) -> (i32, i32) {
    %c0_i32 = arith.constant 0 : i32
    %c0_i32_0 = arith.constant 0 : i32
    %c0_i32_1 = arith.constant 0 : i32
    return %c0_i32, %c0_i32_0 : i32, i32
  }
  func.func @transform_2(%arg0: i32) -> (i32, i32) {
    %c0_i32 = arith.constant 0 : i32
    %c0_i32_0 = arith.constant 0 : i32
    %c0_i32_1 = arith.constant 0 : i32
    return %c0_i32, %c0_i32_0 : i32, i32
  }
  func.func @transform_3(%arg0: i32) -> (i32, i32) {
    %c0_i32 = arith.constant 0 : i32
    %c0_i32_0 = arith.constant 0 : i32
    %c0_i32_1 = arith.constant 0 : i32
    return %c0_i32, %c0_i32_0 : i32, i32
  }
  func.func @transform_4(%arg0: i32) -> (i32, i32) {
    %c0_i32 = arith.constant 0 : i32
    %c0_i32_0 = arith.constant 0 : i32
    %c0_i32_1 = arith.constant 0 : i32
    return %c0_i32, %c0_i32_0 : i32, i32
  }
  func.func @transform_5(%arg0: i32) -> (i32, i32) {
    %c0_i32 = arith.constant 0 : i32
    %c0_i32_0 = arith.constant 0 : i32
    %c0_i32_1 = arith.constant 0 : i32
    return %c0_i32, %c0_i32_0 : i32, i32
  }
  func.func @transform_6(%arg0: i32) -> (i32, i32) {
    %c0_i32 = arith.constant 0 : i32
    %c0_i32_0 = arith.constant 0 : i32
    %c0_i32_1 = arith.constant 0 : i32
    return %c0_i32, %c0_i32_0 : i32, i32
  }
  func.func @transform_7(%arg0: i32) -> (i32, i32) {
    %c0_i32 = arith.constant 0 : i32
    %c0_i32_0 = arith.constant 0 : i32
    return %c0_i32, %arg0 : i32, i32
  }
}

</mosaic_0001>

<bundles_post_ra>
// kernel: tpu_custom_call.1
= control target key start
LH: loop header
LB: loop body
LE: loop exit
PB: predicated region body
PF: predicated region fallthrough
CT: control target
= control target key end

     0   :  { %vm106_vm0 = vcmask 130048   ;;  %v460_v3 = vmov 0   ;;  %s587_s0 = inlined_call_operand.vmem [shape: f32[8,16], index: 0, kind: input, shape index: {}]   ;;  %s588_s1 = inlined_call_operand.vmem [shape: bf16[64,16], index: 1, kind: input, shape index: {}]   ;;  %s589_s2 = inlined_call_operand.vmem [shape: f32[64,1], index: 2, kind: input, shape index: {}]   ;;  %s590_s3 = inlined_call_operand.vmem [shape: bf16[32,64], index: 3, kind: input, shape index: {}]   ;;  %s591_s4 = inlined_call_operand.vmem [shape: f32[32,1], index: 4, kind: input, shape index: {}]   ;;  %s592_s5 = inlined_call_operand.vmem [shape: bf16[2,32], index: 5, kind: input, shape index: {}]   ;;  %s593_s6 = inlined_call_operand.vmem [shape: f32[2,1], index: 6, kind: input, shape index: {}]   ;;  %s594_s7 = inlined_call_operand.hbm [shape: f32[2,8], index: 7, kind: output, shape index: {}]  }
   0x1   :  { %v28_v0 = vld [vmem:[%s587_s0] sm:$0xff]  ;;  %428 = vset.pattern.permute.xlu0 %v460_v3  ;;  %429 = vset.pattern.permute.xlu1 %v460_v3  ;;  %v40_v6 = vld [vmem:[%s589_s2 + $0x10] sm:$0xff]  ;;  %v39_v7 = vld [vmem:[%s589_s2 + $0x8] sm:$0xff] }
   0x2   :  { %v29_v1 = vpack.c.bf16 %v28_v0, %v28_v0  ;;  %v430_v2 = vld [vmem:[%s588_s1] sm:$0xff]   ;;  %58 = vperm.xlu1 %429, %v40_v6   ;;  %v431_v8 = vld [vmem:[%s588_s1 + $0x8] sm:$0xff]   ;;  %v41_v9 = vld [vmem:[%s589_s2 + $0x18] sm:$0xff] }
   0x3   :  { %395 = vmatprep.mubr.msk.bf16.mxu0 %vm106_vm0, %v430_v2  ;;  %v38_v5 = vld [vmem:[%s589_s2] sm:$0xff]  ;;  %v432_v10 = vld [vmem:[%s588_s1 + $0x10] sm:$0xff]  }
   0x4   :  { %423 = vmatprep.subr.msk.bf16.mxu0 %vm106_vm0, %v29_v1  ;;  %v120_v4 = vsel %vm106_vm0, %v29_v1, 0  ;;  %48 = vperm.xlu0 %428, %v38_v5   ;;  %v42_v11 = vld [vmem:[%s589_s2 + $0x20] sm:$0xff] }
   0x5   :  { %394 = vmatpush3.bf16.xpose.msra.mxu0 %v120_v4 }
   0x6   :  { %63 = vperm.xlu1 %429, %v41_v9  }
   0x8   :  { %53 = vperm.xlu0 %428, %v39_v7  }
   0x9   :  { %12 = vsyncpa [#allocation3], 0  ;;  %v43_v12 = vld [vmem:[%s589_s2 + $0x28] sm:$0xff]  ;;  %v44_v13 = vld [vmem:[%s589_s2 + $0x30] sm:$0xff]  ;;  %vm237_vm1 = vcmask 523264   ;;  %v461_v59 = vmov 0.0  }
   0xa   :  { %73 = vperm.xlu1 %429, %v43_v12   ;;  %v433_v14 = vld [vmem:[%s588_s1 + $0x18] sm:$0xff]   ;;  %v203_v16 = vld [vmem:[%s591_s4] sm:$0xff]  ;;  %v204_v17 = vld [vmem:[%s591_s4 + $0x8] sm:$0xff]  ;;  %415 = vmatprep.subr.bf16.mxu0 %v461_v59  ;;  %vm462_vm2 = vmmov 0   ;;  %vm306_vm3 = vcmask 261120   ;;  %s463_s13 = smov [#allocation2]  }
   0xb   :  { %v45_v15 = vld [vmem:[%s589_s2 + $0x38] sm:$0xff]  ;;  %v205_v18 = vld [vmem:[%s591_s4 + $0x10] sm:$0xff]  ;;  %v300_v20 = vld [vmem:[%s593_s6] sm:$0x3]  ;;  %s358_s14 = sshll.u32 %s463_s13, 4  ;;  %vm350_vm4 = vcmask 58368   ;;  %s359_s14 = int_to_ptr.vmem [resolvable:$true] %s358_s14 }
   0xc   :  { %396 = vmatmul.mubr.msk.bf16.vlgmr.msra.gmra.mrb[0].mxu0 %vm106_vm0, %v431_v8  ;;  %68 = vperm.xlu0 %428, %v42_v11   ;;  %v206_v19 = vld [vmem:[%s591_s4 + $0x18] sm:$0xff]  ;;  %v434_v21 = vld [vmem:[%s590_s3] sm:$0xff]   ;;  %v435_v58 = vld [vmem:[%s590_s3 + $0x8] sm:$0xff]   ;;  %s436_s15 = scalar_lea.vmem %s359_s14, 32  ;;  %p441_p1 = scmp.lt.s32.totalorder %s359_s14, %s359_s14 }
   0xd   :  { %399 = vmatprep.mubr.msk.bf16.mxu0 %vm106_vm0, %v432_v10  ;;  %411 = vmatprep.mubr.msk.bf16.mxu1 %vm237_vm1, %v434_v21  ;;  %p437_p0 = scmp.ne.s32.totalorder %s359_s14, %s436_s15  ;;  %p442_p2 = scmp.lt.s32.totalorder %s436_s15, %s436_s15 }
   0xe   :  { %83 = vperm.xlu1 %429, %v45_v15  }
   0xf   :  { %p443_p3 = por %p442_p2, %p441_p1 }
  0x10   :  { %78 = vperm.xlu0 %428, %v44_v13  }
  0x11   :  { %p444_p4 = pnand %p443_p3, %p437_p0 }
  0x12   :  { %214 = vperm.xlu1 %429, %v204_v17  }
  0x14   :  { %400 = vmatmul.mubr.msk.bf16.gmra.mrb[4].mxu0 %vm106_vm0, %v433_v14  ;;  %209 = vperm.xlu0 %428, %v203_v16   ;;  %v297_v14 = vld [vmem:[%s592_s5] sm:$0x1] }
  0x15   :  { %419 = vmatprep.mubr.msk.bf16.mxu0 %vm462_vm2, %v461_v59 }
  0x16   :  { %224 = vperm.xlu1 %429, %v206_v19  }
  0x18   :  { %219 = vperm.xlu0 %428, %v205_v18  }
  0x1c   :  { %303 = vperm.xlu0 %428, %v300_v20  }
  0x81   :  { %v59_v23 = vpop.permute.xlu1 %58 }
  0x83   :  { %v49_v22 = vpop.permute.xlu0 %48 }
  0x85   :  { %v64_v25 = vpop.permute.xlu1 %63 }
  0x87   :  { %v54_v24 = vpop.permute.xlu0 %53 }
  0x89   :  { %v74_v34 = vpop.permute.xlu1 %73 }
  0x8b   :  { %v69_v29 = vpop.permute.xlu0 %68 }
  0x8d   :  { %v84_v46 = vpop.permute.xlu1 %83 }
  0x8f   :  { %v79_v41 = vpop.permute.xlu0 %78 }
  0x91   :  { %v215_v61 = vpop.permute.xlu1 %214 }
  0x93   :  { %v210_v60 = vpop.permute.xlu0 %209 }
  0x95   :  { %v225_v2 = vpop.permute.xlu1 %224 }
  0x97   :  { %v220_v62 = vpop.permute.xlu0 %219 }
  0x9b   :  { %v304_v15 = vpop.permute.xlu0 %303 }
  0xdf   :  { %v397_v26 = vpop.f32.mrb[0].mxu0 }
  0xe0   :  { %v165_v27 = vadd.f32 %v397_v26, %v59_v23  ;;  %v156_v28 = vpop.f32.mrb[1].mxu0 }
  0xe1   :  { %v157_v30 = vadd.f32 %v156_v28, %v49_v22  ;;  %v398_v31 = vpop.f32.mrb[2].mxu0 }
  0xe2   :  { %v168_v32 = vadd.f32 %v398_v31, %v64_v25  ;;  %v159_v33 = vpop.f32.mrb[3].mxu0  ;;  %v189_v36 = vmax.f32 %v165_v27, 0.0 }
  0xe3   :  { %v160_v35 = vadd.f32 %v159_v33, %v54_v24  ;;  %v187_v38 = vmax.f32 %v157_v30, 0.0 }
  0xe4   :  { %v190_v37 = vmax.f32 %v168_v32, 0.0 }
  0xe5   :  { %v188_v39 = vmax.f32 %v160_v35, 0.0 }
  0xe6   :  { %v200_v40 = vpack.c.bf16 %v190_v37, %v189_v36 }
  0xe7   :  { %v401_v42 = vpop.f32.mrb[4].mxu0  ;;  %v199_v43 = vpack.c.bf16 %v188_v39, %v187_v38 }
  0xe8   :  { %v181_v44 = vadd.f32 %v401_v42, %v79_v41  ;;  %v172_v45 = vpop.f32.mrb[5].mxu0 }
  0xe9   :  { %v173_v47 = vadd.f32 %v172_v45, %v69_v29  ;;  %v402_v48 = vpop.f32.mrb[6].mxu0  ;;  %403 = vmatprep.subr.bf16.mxu1 %v199_v43 }
  0xea   :  { %v184_v49 = vadd.f32 %v402_v48, %v84_v46  ;;  %v175_v50 = vpop.f32.mrb[7].mxu0  ;;  %404 = vmatpush3.bf16.msra.mxu1 %v199_v43  ;;  %v193_v52 = vmax.f32 %v181_v44, 0.0 }
  0xeb   :  { %v176_v51 = vadd.f32 %v175_v50, %v74_v34  ;;  %405 = vmatprep.subr.bf16.mxu1 %v200_v40  ;;  %v191_v54 = vmax.f32 %v173_v47, 0.0 }
  0xec   :  { %v194_v53 = vmax.f32 %v184_v49, 0.0 }
  0xed   :  { %v192_v55 = vmax.f32 %v176_v51, 0.0 }
  0xee   :  { %v202_v56 = vpack.c.bf16 %v194_v53, %v193_v52  ;;  %406 = vmatpush3.bf16.msra.mxu1 %v200_v40 }
  0xef   :  { %v201_v57 = vpack.c.bf16 %v192_v55, %v191_v54 }
  0xf1   :  { %407 = vmatprep.subr.bf16.mxu1 %v201_v57 }
  0xf2   :  { %408 = vmatpush3.bf16.msra.mxu1 %v201_v57 }
  0xf3   :  { %409 = vmatprep.subr.bf16.mxu1 %v202_v56 }
  0xf6   :  { %410 = vmatpush3.bf16.msra.mxu1 %v202_v56 }
  0xf9   :  { %412 = vmatmul.mubr.msk.bf16.vlgmr.msra.gmra.mrb[0].mxu1 %vm237_vm1, %v435_v58 }
 0x1cc   :  { %v413_v63 = vpop.f32.mrb[0].mxu1 }
 0x1cd   :  { %v287_v0 = vadd.f32 %v413_v63, %v220_v62  ;;  %v278_v1 = vpop.f32.mrb[1].mxu1 }
 0x1ce   :  { %v279_v3 = vadd.f32 %v278_v1, %v210_v60  ;;  %v414_v4 = vpop.f32.mrb[2].mxu1 }
 0x1cf   :  { %v290_v5 = vadd.f32 %v414_v4, %v225_v2  ;;  %v281_v6 = vpop.f32.mrb[3].mxu1  ;;  %v295_v8 = vmax.f32 %v287_v0, 0.0 }
 0x1d0   :  { %v282_v7 = vadd.f32 %v281_v6, %v215_v61  ;;  %v293_v10 = vmax.f32 %v279_v3, 0.0 }
 0x1d1   :  { %v296_v9 = vmax.f32 %v290_v5, 0.0 }
 0x1d2   :  { %v294_v11 = vmax.f32 %v282_v7, 0.0 }
 0x1d3   :  { %v299_v12 = vpack.c.bf16 %v296_v9, %v295_v8 }
 0x1d4   :  { %v298_v13 = vpack.c.bf16 %v294_v11, %v293_v10 }
 0x1d6   :  { %416 = vmatpush3.bf16.msra.mxu0 %v298_v13 }
 0x1d7   :  { %417 = vmatprep.subr.bf16.mxu0 %v461_v59 }
 0x1da   :  { %418 = vmatpush3.bf16.msra.mxu0 %v299_v12 }
 0x1dd   :  { %420 = vmatmul.mubr.msk.bf16.vlgmr.msra.gmra.mrb[8].mxu0 %vm306_vm3, %v297_v14 }
 0x2b0   :  { %v344_v16 = vpop.f32.mrb[8].mxu0 }
 0x2b1   :  { %v345_v17 = vadd.f32 %v344_v16, %v304_v15  ;;  %v421_v18 = vpop.f32.mrb[9].mxu0 }
 0x2b2   :  { %v347_v19 = vpop.f32.mrb[10].mxu0 }
 0x2b3   :  { %v422_v20 = vpop.f32.mrb[11].mxu0  ;;  %351 = vst.msk [vmem:[#allocation2] sm:$0x3] %vm350_vm4, %v345_v17 }
 0x2b4   :  { %447 = shalt.err (!%p444_p4)
}
 0x2b5   :  { %s448_s17 = scalar_lea.hbm %s594_s7, 32 }
 0x2b6   :  { %p449_p5 = scmp.ne.s32.totalorder %s594_s7, %s448_s17  ;;  %p452_p6 = scmp.lt.u32.totalorder %s448_s17, %s594_s7 }
 0x2b8   :  { %p454_p7 = pnand %p452_p6, %p449_p5 }
 0x2ba   :  { %457 = shalt.err (!%p454_p7)
}
 0x2bb   :  { %361 = dma.vmem_to_hbm [thread:$0]  %s359_s14, 32, %s594_s7, [#allocation3]  }
 0x2bc   :  { %458 = dma.done.wait [#allocation3], 32  }
 0x2bd   :  { %459 = vsyncadd [#allocation3], 4294967264 }
 0x2be   :  { %365 = vsyncpa [#allocation3], 1 }

</bundles_post_ra>
